<compile_context>
chip_gen: v6e
topology: v6e:2x2x1
jax: 0.10.0
libtpu: 0.0.40
codegen_flags: <defaults>
</compile_context>

<pallas_src>
import numpy as np
import jax
import jax.numpy as jnp
from jax import lax
from jax.experimental import pallas as pl
from jax.experimental.pallas import tpu as pltpu


def _make_kernel_1d(k):
    k = np.asarray(k, dtype=np.float32)
    assert k.ndim == 1, "separable 1D blur kernel expected (StyleGAN2 default)"
    return k


def _downfirdn_matrices(k1d, in_h, in_w, factor):
    """Truncated band matrices: Mh @ x @ Mw == upfirdn2d(x, K, up=1, down=factor, pad)."""
    kh = kw = k1d.shape[0]
    p = kh - factor
    pad0, pad1 = (p + 1) // 2, p // 2
    assert pad0 >= 0 and pad1 >= 0
    hp = in_h + pad0 + pad1
    wp = in_w + pad0 + pad1
    out_h = (hp - kh) // factor + 1
    out_w = (wp - kw) // factor + 1
    s = k1d.sum()
    # 2D kernel is outer(k1d, k1d) / sum(k1d)^2; conv uses the flipped kernel.
    kf = k1d[::-1] / s
    mh = np.zeros((out_h, hp), np.float32)
    mw = np.zeros((wp, out_w), np.float32)
    for i in range(out_h):
        mh[i, i * factor:i * factor + kh] = kf
    for j in range(out_w):
        mw[j * factor:j * factor + kw, j] = kf
    # Drop the zero-padded rows/cols of x by truncating the band matrices:
    # mathematically identical, removes the host-side pad (and its HBM copy).
    mh = mh[:, pad0:pad0 + in_h]
    mw = mw[pad0:pad0 + in_w, :]
    return mh, mw, (out_h, out_w)


def _downfirdn_kernel(mh_ref, mw_ref, x_ref, o_ref):
    # mh_ref: (C_BLK, Ho, H) bf16   (pre-broadcast band matrix, H-contraction)
    # mw_ref: (W, Wo)        bf16   (band matrix, W-contraction)
    # x_ref : (C_BLK, H, W)         (input slabs for this channel block)
    # o_ref : (C_BLK, Ho, Wo)
    c_blk, h, w = x_ref.shape
    out_w = mw_ref.shape[1]

    xb = x_ref[...].astype(jnp.bfloat16)                      # bf16 MXU path
    # W contraction: one big 2D matmul over the whole channel block.
    t = jnp.dot(xb.reshape(c_blk * h, w), mw_ref[...],
                preferred_element_type=jnp.float32)           # (C_BLK*H, Wo) f32
    t3 = t.reshape(c_blk, h, out_w).astype(jnp.bfloat16)      # (C_BLK, H, Wo)
    # H contraction: batched matmul over the channel block.
    out = lax.dot_general(
        mh_ref[...], t3,
        dimension_numbers=(((2,), (1,)), ((0,), (0,))),
        preferred_element_type=jnp.float32)                   # (C_BLK, Ho, Wo)
    o_ref[...] = out.astype(o_ref.dtype)


def downsample_upfirdn(x, blur_kernel=(1, 3, 3, 1), factor=2):
    n, c, h, w = x.shape
    k1d = _make_kernel_1d(blur_kernel)
    mh, mw, (out_h, out_w) = _downfirdn_matrices(k1d, h, w, factor)

    nc = n * c
    itemsize = jnp.dtype(x.dtype).itemsize

    # Channel block: biggest divisor of N*C whose input block stays ~<= 2 MiB,
    # preferring a grid extent >= 2 (keeps both v7x TensorCores busy).
    cap = max(1, (2 * 1024 * 1024) // max(1, itemsize * h * w))
    divs = [d for d in range(1, nc + 1) if nc % d == 0 and d <= cap]
    pref = [d for d in divs if nc // d >= 2]
    c_blk = max(pref) if pref else max(divs)
    grid = (nc // c_blk,)

    # Host-side glue (all free reshapes / tiny constants, no spatial pad).
    xf = x.reshape(nc, h, w)
    mw_j = jnp.asarray(mw, dtype=jnp.bfloat16)                       # (W, Wo)
    mh_b = jnp.broadcast_to(jnp.asarray(mh, dtype=jnp.bfloat16)[None],
                            (c_blk, out_h, h))                        # (C_BLK, Ho, H)

    # VMEM budget (double-buffered in/out + f32 intermediate + band matrices).
    est = 4 * (2 * c_blk * h * w + 2 * c_blk * out_h * out_w
               + c_blk * h * out_w + c_blk * out_h * h + w * out_w)
    vmem_limit = int(min(max(6 * est, 16 * 1024 * 1024), 48 * 1024 * 1024))

    flops = 2 * nc * (h * w * out_w + out_h * h * out_w)
    bytes_accessed = int(nc * h * w * itemsize
                         + nc * out_h * out_w * itemsize
                         + 2 * (c_blk * out_h * h + w * out_w))

    out = pl.pallas_call(
        _downfirdn_kernel,
        out_shape=jax.ShapeDtypeStruct((nc, out_h, out_w), x.dtype),
        grid=grid,
        in_specs=[
            pl.BlockSpec((c_blk, out_h, h), lambda i: (0, 0, 0)),
            pl.BlockSpec((w, out_w), lambda i: (0, 0)),
            pl.BlockSpec((c_blk, h, w), lambda i: (i, 0, 0)),
        ],
        out_specs=pl.BlockSpec((c_blk, out_h, out_w), lambda i: (i, 0, 0)),
        compiler_params=pltpu.CompilerParams(
            dimension_semantics=("parallel",),
            vmem_limit_bytes=vmem_limit),
        cost_estimate=pl.CostEstimate(flops=flops, transcendentals=0,
                                      bytes_accessed=bytes_accessed),
    )(mh_b, mw_j, xf)
    return out.reshape(n, c, out_h, out_w)


def _upfirdn_reference(x, k1d, factor):
    """Pure numpy reference of upfirdn2d(up=1, down=factor) as in the PyTorch module."""
    x = np.asarray(x, dtype=np.float32)
    k1d = np.asarray(k1d, dtype=np.float32)
    k2d = np.outer(k1d, k1d)
    k2d = k2d / k2d.sum()
    kh, kw = k2d.shape
    p = kh - factor
    pad0, pad1 = (p + 1) // 2, p // 2
    n, c, h, w = x.shape
    xp = np.pad(x, ((0, 0), (0, 0), (pad0, pad1), (pad0, pad1)))
    wf = k2d[::-1, ::-1]
    ho = (h + pad0 + pad1 - kh) // factor + 1
    wo = (w + pad0 + pad1 - kw) // factor + 1
    out = np.zeros((n, c, ho, wo), np.float32)
    for a in range(kh):
        for b in range(kw):
            out += wf[a, b] * xp[:, :,
                                 a:a + factor * (ho - 1) + 1:factor,
                                 b:b + factor * (wo - 1) + 1:factor]
    return out


if __name__ == "__main__":
    key = jax.random.PRNGKey(0)
    N, C, H, W = 2, 4, 16, 16
    x = jax.random.normal(key, (N, C, H, W), dtype=jnp.float32)

    blur_kernel = (1, 3, 3, 1)   # StyleGAN2 default blur kernel
    factor = 2

    out = downsample_upfirdn(x, blur_kernel=blur_kernel, factor=factor)
    out = jax.block_until_ready(out)

    ref = _upfirdn_reference(np.asarray(x), blur_kernel, factor)
    assert out.shape == ref.shape == (N, C, H // factor, W // factor)
    # bf16 MXU operands (f32 accumulation) -> slightly loosened tolerance.
    np.testing.assert_allclose(np.asarray(out), ref, rtol=2e-2, atol=2e-2)

    print("KERNEL_OK")
</pallas_src>

<mosaic_0001>
module attributes {stable_mosaic.version = 11 : i64} {
  func.func @_downfirdn_kernel(%arg0: i32, %arg1: memref<4x8x16xbf16, #tpu.memory_space<vmem>>, %arg2: memref<16x8xbf16, #tpu.memory_space<vmem>>, %arg3: memref<4x16x16xf32, #tpu.memory_space<vmem>>, %arg4: memref<4x8x8xf32, #tpu.memory_space<vmem>>) attributes {dimension_semantics = [#tpu.dimension_semantics<parallel>], iteration_bounds = array<i64: 2>, scalar_prefetch = 0 : i64, scratch_operands = 0 : i64, tpu.core_type = #tpu.core_type<tc>, window_params = [{pipeline_mode = #tpu.pipeline_mode<synchronous>, transform_indices = @transform_0, window_bounds = array<i64: 4, 8, 16>}, {pipeline_mode = #tpu.pipeline_mode<synchronous>, transform_indices = @transform_1, window_bounds = array<i64: 16, 8>}, {transform_indices = @transform_2, window_bounds = array<i64: 4, 16, 16>}, {transform_indices = @transform_3, window_bounds = array<i64: 4, 8, 8>}]} {
    %c0 = arith.constant 0 : index
    %c0_0 = arith.constant 0 : index
    %c0_1 = arith.constant 0 : index
    %0 = vector.load %arg3[%c0, %c0_0, %c0_1] : memref<4x16x16xf32, #tpu.memory_space<vmem>>, vector<4x16x16xf32>
    %1 = arith.truncf %0 : vector<4x16x16xf32> to vector<4x16x16xbf16>
    %2 = vector.shape_cast %1 : vector<4x16x16xbf16> to vector<64x16xbf16>
    %c0_2 = arith.constant 0 : index
    %c0_3 = arith.constant 0 : index
    %3 = vector.load %arg2[%c0_2, %c0_3] : memref<16x8xbf16, #tpu.memory_space<vmem>>, vector<16x8xbf16>
    %cst = arith.constant dense<0.000000e+00> : vector<64x8xf32>
    %4 = tpu.matmul %2, %3, %cst {dimension_numbers = #tpu.dot_dimension_numbers<[1], [0], [0], [1], [0, 0, 1, 1], [], []>} : vector<64x16xbf16>, vector<16x8xbf16>, vector<64x8xf32> -> vector<64x8xf32>
    %5 = vector.shape_cast %4 : vector<64x8xf32> to vector<4x16x8xf32>
    %6 = arith.truncf %5 : vector<4x16x8xf32> to vector<4x16x8xbf16>
    %c0_4 = arith.constant 0 : index
    %c0_5 = arith.constant 0 : index
    %c0_6 = arith.constant 0 : index
    %7 = vector.load %arg1[%c0_4, %c0_5, %c0_6] : memref<4x8x16xbf16, #tpu.memory_space<vmem>>, vector<4x8x16xbf16>
    %cst_7 = arith.constant dense<0.000000e+00> : vector<4x8x8xf32>
    %8 = tpu.matmul %7, %6, %cst_7 {dimension_numbers = #tpu.dot_dimension_numbers<[2], [1], [1], [2], [0, 0, 0, 1, 1, 2], [0], [0]>} : vector<4x8x16xbf16>, vector<4x16x8xbf16>, vector<4x8x8xf32> -> vector<4x8x8xf32>
    %c0_8 = arith.constant 0 : index
    %c0_9 = arith.constant 0 : index
    %c0_10 = arith.constant 0 : index
    %9 = vector.load %arg4[%c0_8, %c0_9, %c0_10] : memref<4x8x8xf32, #tpu.memory_space<vmem>>, vector<4x8x8xf32>
    tpu.vector_store %arg4[%c0_8, %c0_9, %c0_10], %8 {strides = array<i32>} : memref<4x8x8xf32, #tpu.memory_space<vmem>>, vector<4x8x8xf32>,
    return
  }
  func.func @transform_0(%arg0: i32) -> (i32, i32, i32) {
    %c0_i32 = arith.constant 0 : i32
    %c0_i32_0 = arith.constant 0 : i32
    %c0_i32_1 = arith.constant 0 : i32
    %c0_i32_2 = arith.constant 0 : i32
    return %c0_i32, %c0_i32_0, %c0_i32_1 : i32, i32, i32
  }
  func.func @transform_1(%arg0: i32) -> (i32, i32) {
    %c0_i32 = arith.constant 0 : i32
    %c0_i32_0 = arith.constant 0 : i32
    %c0_i32_1 = arith.constant 0 : i32
    return %c0_i32, %c0_i32_0 : i32, i32
  }
  func.func @transform_2(%arg0: i32) -> (i32, i32, i32) {
    %c0_i32 = arith.constant 0 : i32
    %c0_i32_0 = arith.constant 0 : i32
    %c0_i32_1 = arith.constant 0 : i32
    return %arg0, %c0_i32, %c0_i32_0 : i32, i32, i32
  }
  func.func @transform_3(%arg0: i32) -> (i32, i32, i32) {
    %c0_i32 = arith.constant 0 : i32
    %c0_i32_0 = arith.constant 0 : i32
    %c0_i32_1 = arith.constant 0 : i32
    return %arg0, %c0_i32, %c0_i32_0 : i32, i32, i32
  }
}

</mosaic_0001>

<bundles_post_ra>
// kernel: tpu_custom_call.1
= control target key start
LH: loop header
LB: loop body
LE: loop exit
PB: predicated region body
PF: predicated region fallthrough
CT: control target
= control target key end

     0   :  { %8 = vsyncpa [#allocation3], 0  ;;  %s1084_s0 = inlined_call_operand.hbm [shape: bf16[4,8,16], index: 0, kind: input, shape index: {}]   ;;  %s1085_s1 = inlined_call_operand.vmem [shape: bf16[16,8], index: 1, kind: input, shape index: {}]   ;;  %s1086_s2 = inlined_call_operand.hbm [shape: f32[8,16,16], index: 2, kind: input, shape index: {}]   ;;  %s1087_s3 = inlined_call_operand.hbm [shape: f32[8,8,8], index: 3, kind: output, shape index: {}]  }
   0x1   :  { %9 = vsyncpa [#allocation6], 0 }
   0x2   :  { %11 = vsyncpa [#allocation6 + $0x1], 0 }
   0x3   :  { %12 = vsyncpa [#allocation4], 0 }
   0x4   :  { %14 = vsyncpa [#allocation4 + $0x1], 0  ;;  %s887_s12 = smov 0   ;;  %s889_s13 = smov 0  }
   0x5   :  { %s891_s14 = smov 0   ;;  %s893_s15 = smov 0  }
   0x6 LB: > { %s908_s16 = sadd.s32 4294967295, %s854_s15   ;;  %s590_s17 = sadd.s32 4294967294, %s854_s15   ;;  %s854_s15 = sphi %s893_s15, %s1109_s15   ;;  %s850_s14 = sphi %s891_s14, %s1108_s14   ;;  %s846_s13 = sphi %s889_s13, %s1107_s13   ;;  %s842_s12 = sphi %s887_s12, %s1106_s12  }
   0x7   : > { %p82_p0 = scmp.ne.s32.totalorder %s846_s13, %s842_s12  ;;  %p1088_p1 = scmp.eq.s32.totalorder %s908_s16, 0 }
   0x8   : > { %p112_p3 = scmp.eq.s32.totalorder %s590_s17, 1  ;;  %p591_p5 = scmp.ge.s32.totalorder %s854_s15, 1 }
   0x9   : > { %p917_p4 = por %p1088_p1, %p82_p0  ;;  %p119_p7 = scmp.lt.s32.totalorder %s854_s15, 3 }
   0xa   : > { %p922_p6 = por %p112_p3, %p82_p0  ;;  %s856_s21 = smov [#allocation2]  }
   0xb   : > { %s1092_s18 = scalar_select %p917_p4, 1, 0 }
   0xc   : > { %s1093_s19 = scalar_select %p922_p6, 1, 0 }
   0xd   : > { %p927_p8 = pnand %p591_p5, %p119_p7  ;;  %s131_s22 = sshll.u32 %s856_s21, 4  ;;  %s132_s22 = int_to_ptr.vmem [resolvable:$true] %s131_s22 }
   0xe   : > { %s941_s24 = sadd.s32 1, %s854_s15   ;;  %s69_s25 = sadd.s32 1, %s850_s14 }
   0xf   : > { %s1094_s20 = scalar_select %p927_p8, 1, 0 }
  0x10   : > { %p674_p9 = pneg %p927_p8  ;;  %s66_s26 = ssub.s32 %s854_s15, %s941_s24 }
  0x11   : > { %s743_s27 = scalar_lea.vmem %s132_s22, 256  ;;  %p751_p5 = scmp.lt.s32.totalorder %s132_s22, %s132_s22 }
  0x12   : > { %p936_p11 = pnand %p674_p9, %p1088_p1  ;;  %p744_p13 = scmp.ne.s32.totalorder %s132_s22, %s743_s27 }
  0x13   : > { %p752_p7 = scmp.lt.s32.totalorder %s743_s27, %s743_s27 }
  0x14   : > { %p734_p12 = pneg %p936_p11 }
  0x15   : > { %p753_p10 = por %p752_p7, %p751_p5 }
  0x16   : > { %p746_p0 = pnand %p744_p13, %p734_p12 }
  0x18   : > { %p747_p3 = pneg %p746_p0 }
  0x1a   : > { %p754_p2 = pnand %p753_p10, %p747_p3 }
  0x1c   : > { %757 = shalt.err (!%p754_p2)
}
  0x1d   : > { %s857_s28 = smov 64   ;;  %s858_s29 = smov 4  }
  0x1e   : > { %677 = dma.hbm_to_vmem [thread:$0]  (!%p936_p11), %s1084_s0, 256, %s132_s22, [#allocation3], %s857_s28, %s857_s28, %s858_s29  }
  0x1f   : > { %p67_p9 = scmp.eq.s32.totalorder %s66_s26, 0  ;;  %p76_p12 = scmp.ne.s32.totalorder %s850_s14, %s846_s13 }
  0x20   : > { %p77_p10 = scmp.eq.s32.totalorder %s854_s15, 0  ;;  %p687_p2 = scmp.lt.s32.totalorder %s854_s15, 2 }
  0x21   : > { %s958_s5 = scalar_select %p67_p9, %s850_s14, %s69_s25  }
  0x22   : > { %p78_p13 = por %p77_p10, %p76_p12  ;;  %p1096_p0 = scmp.eq.s32.totalorder %s908_s16, 1 }
  0x23   : > { %s148_s7 = sand.u32 1, %s850_s14   ;;  %s617_s8 = sshll.u32 %s854_s15, 10 }
  0x24   : > { %p962_p3 = por %p1096_p0, %p76_p12  ;;  %s594_s9 = sshll.u32 %s148_s7, 6 }
  0x25   : > { %s971_s17 = scalar_lea.hbm %s1086_s2, %s617_s8  ;;  %s152_s21 = scalar_lea.vmem [#allocation5], %s594_s9 }
  0x26   : > { %s1097_s6 = scalar_select %p962_p3, 1, 0 }
  0x27   : > { %s160_s22 = sshll.u32 %s152_s21, 4  ;;  %p973_p11 = pnand %p687_p2, %p78_p13  ;;  %s977_s22 = int_to_ptr.vmem [resolvable:$true] %s160_s22 }
  0x28   : > { %s979_s25 = scalar_lea.sflag [#allocation6], %s148_s7  ;;  %s758_s26 = scalar_lea.hbm %s971_s17, 1024 }
  0x29   : > { %p759_p5 = scmp.ne.s32.totalorder %s971_s17, %s758_s26  ;;  %p760_p7 = pneg %p973_p11 }
  0x2a   : > { %s763_s29 = scalar_lea.hbm %s1086_s2, 2048  ;;  %p764_p10 = scmp.lt.s32.totalorder %s971_s17, %s1086_s2 }
  0x2b   : > { %p761_p9 = pnand %p760_p7, %p759_p5  ;;  %p765_p2 = scmp.lt.s32.totalorder %s763_s29, %s758_s26 }
  0x2d   : > { %p762_p12 = pneg %p761_p9  ;;  %p766_p13 = por %p765_p2, %p764_p10 }
  0x2f   : > { %p767_p0 = pnand %p766_p13, %p762_p12 }
  0x31   : > { %770 = shalt.err (!%p767_p0)
}
  0x32   : > { %s771_s7 = scalar_lea.vmem %s977_s22, 1024  ;;  %s859_s8 = smov [#allocation5]  }
  0x33   : > { %p772_p1 = scmp.ne.s32.totalorder %s977_s22, %s771_s7  ;;  %s776_s9 = sshll.u32 %s859_s8, 4  ;;  %s777_s9 = int_to_ptr.vmem [resolvable:$false] %s776_s9 }
  0x34   : > { %s778_s10 = scalar_lea.vmem %s777_s9, 2048  ;;  %p779_p9 = scmp.lt.s32.totalorder %s977_s22, %s777_s9 }
  0x35   : > { %p774_p6 = pnand %p772_p1, %p760_p7  ;;  %p780_p3 = scmp.lt.s32.totalorder %s778_s10, %s771_s7 }
  0x37   : > { %p775_p5 = pneg %p774_p6  ;;  %p781_p4 = por %p780_p3, %p779_p9 }
  0x39   : > { %p782_p8 = pnand %p781_p4, %p775_p5 }
  0x3b   : > { %785 = shalt.err (!%p782_p8)
}
  0x3c   : > { %s860_s11 = smov 128   ;;  %s861_s21 = smov 8  }
  0x3d   : > { %681 = dma.hbm_to_vmem [thread:$0]  (!%p973_p11), %s971_s17, 1024, %s977_s22, %s979_s25, %s860_s11, %s860_s11, %s861_s21  }
  0x3e   : > { %p1099_p1 = scmp.ne.s32.totalorder %s1094_s20, 0 }
  0x3f   : > { %p1100_p6 = scmp.eq.s32.totalorder (!%p1099_p1), %s908_s16, 0 }
  0x40   : > { %172 = sbr.rel (%p1099_p1) target bundleno = 508 (0x1fc), region = 32 }
  0x45   : > { %829 = dma.done.wait (%p1100_p6), [#allocation3], 256   ;;  %p1101_p7 = pmov %p1100_p6 }
  0x46   : > { %s1007_s26 = sand.u32 1, %s846_s13   ;;  %p1102_p4 = scmp.ne.s32.totalorder %s1092_s18, 0 }
  0x47   : > { %831 = vsyncadd (%p1101_p7), [#allocation3], 4294967040  ;;  %s600_s27 = sshll.u32 %s1007_s26, 6  ;;  %s179_s28 = scalar_lea.sflag [#allocation6], %s1007_s26 }
  0x48   : > { %s182_s29 = scalar_lea.vmem [#allocation5], %s600_s27 }
  0x49   : > { %833 = dma.done.wait (%p1102_p4), %s179_s28, 1024  }
  0x4a   : > { %835 = vsyncadd (%p1102_p4), %s179_s28, 4294966272  ;;  %v731_v0 = vld [vmem:[%s1085_s1] sm:$0xff]   ;;  %v208_v1 = vld [vmem:[%s182_s29] sm:$0xff]  ;;  %vm228_vm0 = vcmask 130048   ;;  %v862_v13 = vmov 0.0   ;;  %vm863_vm1 = vmmov 0  }
  0x4b   : > { %v209_v2 = vld [vmem:[%s182_s29 + $0x8] sm:$0xff]  ;;  %v210_v3 = vld [vmem:[%s182_s29 + $0x10] sm:$0xff]  ;;  %632 = vmatprep.subr.bf16.mxu0 %v731_v0  ;;  %v211_v5 = vld [vmem:[%s182_s29 + $0x18] sm:$0xff]  ;;  %642 = vmatprep.subr.bf16.mxu1 %v862_v13  ;;  %s601_s18 = sshll.u32 %s1007_s26, 5  ;;  %vm486_vm2 = vcmask 64512   ;;  %s618_s25 = sshll.u32 %s908_s16, 9 }
  0x4c   : > { %v216_v4 = vpack.c.bf16 %v209_v2, %v208_v1  ;;  %v212_v6 = vld [vmem:[%s182_s29 + $0x20] sm:$0xff]  ;;  %v213_v7 = vld [vmem:[%s182_s29 + $0x28] sm:$0xff]  ;;  %633 = vmatpush3.bf16.msra.mxu0 %v731_v0  ;;  %v217_v8 = vpack.c.bf16 %v211_v5, %v210_v3  ;;  %v214_v10 = vld [vmem:[%s182_s29 + $0x30] sm:$0xff]  ;;  %644 = vmatprep.mubr.msk.bf16.mxu1 %vm863_vm1, %v862_v13  ;;  %s204_s22 = scalar_lea.vmem [#allocation7], %s601_s18  ;;  %s1040_s7 = scalar_lea.hbm %s1087_s3, %s618_s25 }
  0x4d   : > { %v218_v9 = vpack.c.bf16 %v213_v7, %v212_v6  ;;  %v215_v11 = vld [vmem:[%s182_s29 + $0x38] sm:$0xff]  ;;  %654 = vmatprep.subr.bf16.mxu0 %v862_v13  ;;  %v310_v20 = vld [vmem:[#allocation2] sm:$0xf]  ;;  %v311_v27 = vld [vmem:[#allocation2 + $0x4] sm:$0xf]  ;;  %s505_s23 = sshll.u32 %s204_s22, 4  ;;  %s1035_s23 = int_to_ptr.vmem [resolvable:$true] %s505_s23 }
  0x4e   : > { %634 = vmatprep.mubr.msk.bf16.mxu0 %vm228_vm0, %v216_v4  ;;  %v219_v12 = vpack.c.bf16 %v215_v11, %v214_v10  ;;  %v312_v28 = vld [vmem:[#allocation2 + $0x8] sm:$0xf]  ;;  %v313_v29 = vld [vmem:[#allocation2 + $0xc] sm:$0xf]  ;;  %s492_s8 = scalar_lea.sflag [#allocation4], %s1007_s26  ;;  %s786_s16 = scalar_lea.vmem %s1035_s23, 512 }
  0x4f   : > { %635 = vmatmul.mubr.msk.bf16.vlgmr.msra.gmra.mxu0 %vm228_vm0, %v217_v8  ;;  %p787_p8 = scmp.ne.s32.totalorder %s1035_s23, %s786_s16  ;;  %p1103_p3 = scmp.ne.s32.totalorder %s1097_s6, 0 }
  0x50   : > { %638 = vmatprep.mubr.msk.bf16.mxu0 %vm228_vm0, %v218_v9  ;;  %s864_s9 = smov [#allocation7]  }
  0x51   : > { %p788_p11 = pnand %p787_p8, %p1103_p3  ;;  %s790_s10 = sshll.u32 %s864_s9, 4  ;;  %s791_s10 = int_to_ptr.vmem [resolvable:$false] %s790_s10 }
  0x52   : > { %s792_s11 = scalar_lea.vmem %s791_s10, 1024  ;;  %p793_p10 = scmp.lt.s32.totalorder %s1035_s23, %s791_s10 }
  0x53   : > { %p789_p12 = pneg %p788_p11  ;;  %p794_p2 = scmp.lt.s32.totalorder %s792_s11, %s786_s16 }
  0x55   : > { %p795_p13 = por %p794_p2, %p793_p10 }
  0x57   : > { %639 = vmatmul.mubr.msk.bf16.gmra.mxu0 %vm228_vm0, %v219_v12  ;;  %p796_p0 = pnand %p795_p13, %p789_p12 }
  0x58   : > { %656 = vmatprep.mubr.msk.bf16.mxu0 %vm863_vm1, %v862_v13 }
 0x10f   : > { %v636_v14 = vpop.f32.mrf.mxu0 }
 0x111   : > { %v275_v15 = vpop.f32.mrf.mxu0 }
 0x113   : > { %v637_v16 = vpop.f32.mrf.mxu0 }
 0x114   : > { %v307_v22 = vpack.c.bf16 %v637_v16, %v636_v14 }
 0x115   : > { %v278_v17 = vpop.f32.mrf.mxu0 }
 0x116   : > { %v306_v18 = vpack.c.bf16 %v278_v17, %v275_v15 }
 0x117   : > { %v640_v19 = vpop.f32.mrf.mxu0 }
 0x118   : > { %643 = vmatpush3.bf16.msra.mxu1 %v306_v18 }
 0x119   : > { %v291_v21 = vpop.f32.mrf.mxu0  ;;  %648 = vmatprep.subr.bf16.mxu1 %v862_v13 }
 0x11b   : > { %v641_v23 = vpop.f32.mrf.mxu0  ;;  %645 = vmatmul.mubr.msk.bf16.vlgmr.msra.gmra.mxu1 %vm228_vm0, %v310_v20 }
 0x11c   : > { %649 = vmatpush3.bf16.msra.mxu1 %v307_v22  ;;  %650 = vmatprep.mubr.msk.bf16.mxu1 %vm863_vm1, %v862_v13  ;;  %v309_v26 = vpack.c.bf16 %v641_v23, %v640_v19 }
 0x11d   : > { %v294_v24 = vpop.f32.mrf.mxu0  ;;  %660 = vmatprep.subr.bf16.mxu1 %v862_v13 }
 0x11e   : > { %v308_v25 = vpack.c.bf16 %v294_v24, %v291_v21 }
 0x120   : > { %655 = vmatpush3.bf16.msra.mxu0 %v308_v25 }
 0x123   : > { %651 = vmatmul.mubr.msk.bf16.vlgmr.msra.gmra.mxu1 %vm228_vm0, %v311_v27  ;;  %657 = vmatmul.mubr.msk.bf16.vlgmr.msra.gmra.mxu0 %vm228_vm0, %v312_v28 }
 0x124   : > { %661 = vmatpush3.bf16.msra.mxu1 %v309_v26  ;;  %662 = vmatprep.mubr.msk.bf16.mxu1 %vm863_vm1, %v862_v13 }
 0x12b   : > { %663 = vmatmul.mubr.msk.bf16.vlgmr.msra.gmra.mxu1 %vm228_vm0, %v313_v29 }
 0x1db   : > { %v351_v30 = vpop.f32.mrf.mxu1 }
 0x1dc   : > { %487 = vst.msk [vmem:[%s204_s22] sm:$0xff] %vm486_vm2, %v351_v30 }
 0x1dd   : > { %v646_v31 = vpop.f32.mrf.mxu1 }
 0x1df   : > { %v354_v32 = vpop.f32.mrf.mxu1 }
 0x1e1   : > { %v647_v33 = vpop.f32.mrf.mxu1 }
 0x1e3   : > { %v394_v34 = vpop.f32.mrf.mxu1  ;;  %v437_v35 = vpop.f32.mrf.mxu0 }
 0x1e4   : > { %488 = vst.msk [vmem:[%s204_s22 + $0x8] sm:$0xff] %vm486_vm2, %v394_v34  ;;  %489 = vst.msk [vmem:[%s204_s22 + $0x10] sm:$0xff] %vm486_vm2, %v437_v35 }
 0x1e5   : > { %v652_v36 = vpop.f32.mrf.mxu1  ;;  %v658_v37 = vpop.f32.mrf.mxu0 }
 0x1e7   : > { %v397_v38 = vpop.f32.mrf.mxu1  ;;  %v440_v39 = vpop.f32.mrf.mxu0 }
 0x1e9   : > { %v653_v40 = vpop.f32.mrf.mxu1  ;;  %v659_v41 = vpop.f32.mrf.mxu0 }
 0x1eb   : > { %v480_v42 = vpop.f32.mrf.mxu1 }
 0x1ec   : > { %490 = vst.msk [vmem:[%s204_s22 + $0x18] sm:$0xff] %vm486_vm2, %v480_v42 }
 0x1ed   : > { %v664_v43 = vpop.f32.mrf.mxu1 }
 0x1ee   : > { %799 = shalt.err (!%p796_p0)
}
 0x1ef   : > { %s800_s21 = scalar_lea.hbm %s1040_s7, 512  ;;  %s804_s29 = scalar_lea.hbm %s1087_s3, 1024 }
 0x1f0   : > { %p801_p5 = scmp.ne.s32.totalorder %s1040_s7, %s800_s21  ;;  %p805_p6 = scmp.lt.s32.totalorder %s1040_s7, %s1087_s3 }
 0x1f1   : > { %p806_p7 = scmp.lt.s32.totalorder %s804_s29, %s800_s21 }
 0x1f2   : > { %p802_p9 = pnand %p801_p5, %p1103_p3 }
 0x1f3   : > { %p807_p4 = por %p806_p7, %p805_p6 }
 0x1f4   : > { %p803_p1 = pneg %p802_p9 }
 0x1f6   : > { %p808_p8 = pnand %p807_p4, %p803_p1 }
 0x1f8   : > { %811 = shalt.err (!%p808_p8)
}
 0x1f9   : > { %s865_s18 = smov 128   ;;  %s866_s22 = smov 8   ;;  %v483_v44 = vpop.f32.mrf.mxu1 }
 0x1fa   : > { %672 = dma.vmem_to_hbm [thread:$0]  (%p1103_p3), %s1035_s23, 512, %s1040_s7, %s492_s8, %s865_s18, %s865_s18, %s866_s22  }
 0x1fb   : > { %v665_v45 = vpop.f32.mrf.mxu1 }
 0x1fc PF: > { %s520_s25 = sand.u32 1, %s842_s12   ;;  %p1104_p11 = scmp.ne.s32.totalorder %s1093_s19, 0 }
 0x1fd   : > { %p1105_p12 = scmp.ge.s32.totalorder %s854_s15, 2  ;;  %s521_s30 = scalar_lea.sflag [#allocation4], %s520_s25 }
 0x1ff   : > { %p683_p10 = pnand %p1105_p12, %p1104_p11 }
 0x201   : > { %p684_p2 = pneg %p683_p10 }
 0x203   : > { %837 = dma.done.wait (%p684_p2), %s521_s30, 512  }
 0x204   : > { %839 = vsyncadd (%p684_p2), %s521_s30, 4294966784  ;;  %p17_p3 = scmp.ge.s32.totalorder %s941_s24, 4   ;;  %s1106_s12 = smov %s846_s13 }
 0x205   : > { %s1107_s13 = smov %s850_s14  ;;  %s1108_s14 = smov %s958_s5 }
 0x206   : > { %s1109_s15 = smov %s941_s24  ;;  %19 = sbr.rel (!%p17_p3) target bundleno = 6 (0x6), region = 82 }
 0x20b   :  { %526 = vsyncpa [#allocation3], 1 }
 0x20c   :  { %528 = vsyncpa [#allocation3 + $0x1], 1 }
 0x20d   :  { %529 = vsyncpa [#allocation6], 1 }
 0x20e   :  { %531 = vsyncpa [#allocation6 + $0x1], 1 }
 0x20f   :  { %532 = vsyncpa [#allocation4], 1 }
 0x210   :  { %534 = vsyncpa [#allocation4 + $0x1], 1 }

</bundles_post_ra>
